<compile_context>
chip_gen: v7x
topology: tpu7x:2x2x1
jax: 0.10.0
libtpu: 0.0.40
codegen_flags: <defaults>
</compile_context>

<pallas_src>
import functools

import jax
import jax.numpy as jnp
from jax.experimental import pallas as pl
from jax.experimental.pallas import tpu as pltpu


def _round_up(x: int, m: int) -> int:
    return ((x + m - 1) // m) * m


def _choose_row_tile(n: int, row_tile: int) -> int:
    """Rows per grid step.

    Big lane-aligned tiles amortize the per-step grid overhead; for n >= 1024
    force an even number (>= 2) of roughly equal tiles so the parallel row
    axis splits evenly across v7x's two TensorCores.
    """
    if n < 1024:
        return n                         # single full-array block (always legal)
    row_tile = max(128, _round_up(row_tile, 128))
    num_tiles = max(2, pl.cdiv(n, row_tile))
    if num_tiles % 2:
        num_tiles += 1                   # even 2-TC split on v7x
    return _round_up(pl.cdiv(n, num_tiles), 128)


def _projection_kernel(x_ref, w1_ref, b1_ref, w2_ref, b2_ref, o_ref, *,
                       range_clipping: bool, compute_dtype):
    # x_ref: (TN, D); w1_ref: (D, H); b1_ref: (1, H); w2_ref: (8, H) (row 0
    # replicated); b2_ref: (1, 1); o_ref: (1, 1, TN).
    x = x_ref[...].astype(compute_dtype)     # in-kernel cast: no extra HBM pass
    # Linear 1 on the MXU, f32 accumulation.
    h = jnp.dot(x, w1_ref[...], preferred_element_type=jnp.float32)
    # Bias + ReLU in f32 (v5e VPU has no bf16 elementwise).
    h = jnp.maximum(h + b1_ref[...], 0.0)
    # Dropout(p=0.3): identity in eval/inference mode.
    # TODO(synk): training-mode dropout would use pltpu.prng_seed +
    # pltpu.stateful_bernoulli; omitted to keep the forward deterministic.
    # Linear 2 (H -> 1) as w2 @ h^T on the MXU: same A@B^T dimension numbers
    # as flash-attention's q@k^T.  The result already has rows on lanes, so
    # the store below is lane-dense (unmasked vst, contiguous HBM writeback).
    out = jax.lax.dot_general(
        w2_ref[...], h.astype(compute_dtype),
        dimension_numbers=(((1,), (1,)), ((), ())),
        preferred_element_type=jnp.float32)   # (8, TN); all rows identical
    out = out[0:1, :] + b2_ref[...]           # (1, TN), f32 epilogue
    if range_clipping:
        out = jnp.tanh(out) * 2.0 + 3.0       # EUP tanh
    o_ref[...] = out[None].astype(o_ref.dtype)   # (1, 1, TN)


def projection_forward(x, w1, b1, w2, b2, *, range_clipping: bool = False,
                       compute_dtype=jnp.bfloat16, row_tile: int = 16384):
    """x: (batch, seq, input_dim) -> (batch, seq, 1) float32.

    Eval-mode Projection.forward: Linear -> ReLU -> Dropout(identity) ->
    Linear [-> tanh*2+3 if range_clipping].
    w1: (input_dim, hidden_dim) (transposed vs. torch), b1: (hidden_dim,),
    w2: (hidden_dim, 1), b2: (1,).
    """
    batch, seq, input_dim = x.shape
    hidden_dim = w1.shape[1]
    n = batch * seq

    tn = _choose_row_tile(n, row_tile)
    num_tiles = pl.cdiv(n, tn)

    # Free view; x keeps its native dtype (cast happens in-kernel), and the
    # ragged last row-tile is handled by Pallas's masked partial block.
    x2d = x.reshape(n, input_dim)

    w1c = w1.astype(compute_dtype)                              # (D, H), tiny
    b1_2d = b1.reshape(1, hidden_dim).astype(jnp.float32)       # (1, H)
    # (H, 1) -> (1, H), replicated to 8 sublanes (sublane-aligned M for MXU).
    w2_rep = jnp.broadcast_to(w2.reshape(1, hidden_dim),
                              (8, hidden_dim)).astype(compute_dtype)
    b2_2d = b2.reshape(1, 1).astype(jnp.float32)

    kernel = functools.partial(_projection_kernel,
                               range_clipping=range_clipping,
                               compute_dtype=compute_dtype)

    w_itemsize = jnp.dtype(compute_dtype).itemsize
    cost = pl.CostEstimate(
        flops=2 * n * input_dim * hidden_dim + 4 * n * hidden_dim,
        transcendentals=n if range_clipping else 0,
        bytes_accessed=(n * input_dim * x.dtype.itemsize      # x read (native)
                        + num_tiles * tn * 4                  # lane-dense out
                        + input_dim * hidden_dim * w_itemsize # W1
                        + (hidden_dim + 8 * hidden_dim + 1) * 4))

    out3 = pl.pallas_call(
        kernel,
        out_shape=jax.ShapeDtypeStruct((num_tiles, 1, tn), jnp.float32),
        grid=(num_tiles,),
        in_specs=[
            # x: one (TN, D) row tile per step; Pallas double-buffers the DMA.
            pl.BlockSpec((tn, input_dim), lambda i: (i, 0)),
            # Parameters: constant index maps -> VMEM-resident across steps.
            pl.BlockSpec((input_dim, hidden_dim), lambda i: (0, 0)),
            pl.BlockSpec((1, hidden_dim), lambda i: (0, 0)),
            pl.BlockSpec((8, hidden_dim), lambda i: (0, 0)),
            pl.BlockSpec((1, 1), lambda i: (0, 0)),
        ],
        # One lane-dense (1, 1, TN) row per tile -> contiguous HBM writeback.
        out_specs=pl.BlockSpec((1, 1, tn), lambda i: (i, 0, 0)),
        compiler_params=pltpu.CompilerParams(
            dimension_semantics=("parallel",),        # v7x 2-TC row split
            vmem_limit_bytes=32 * 1024 * 1024),
        cost_estimate=cost,
    )(x2d, w1c, b1_2d, w2_rep, b2_2d)

    # Rows are already in logical order; drop the padded tail of the
    # (possibly partial) last tile.
    return out3.reshape(num_tiles * tn)[:n].reshape(batch, seq, 1)


if __name__ == "__main__":
    # Small deterministic setup consistent with the module:
    #   input_dim=32, hidden_dim=32, activation=ReLU, output_dim=1
    batch, seq, input_dim, hidden_dim = 2, 8, 32, 32

    key = jax.random.PRNGKey(0)
    kx, kw1, kb1, kw2, kb2 = jax.random.split(key, 5)

    x = jax.random.normal(kx, (batch, seq, input_dim), dtype=jnp.float32)
    # Weights stored transposed vs. PyTorch nn.Linear (out,in) -> (in,out).
    w1 = jax.random.normal(kw1, (input_dim, hidden_dim), jnp.float32) * 0.1
    b1 = jax.random.normal(kb1, (hidden_dim,), jnp.float32) * 0.1
    w2 = jax.random.normal(kw2, (hidden_dim, 1), jnp.float32) * 0.1
    b2 = jax.random.normal(kb2, (1,), jnp.float32) * 0.1

    def reference(xx):
        h = jnp.maximum(xx.reshape(-1, input_dim) @ w1 + b1, 0.0)
        return (h @ w2 + b2).reshape(xx.shape[0], xx.shape[1], 1)

    ref = reference(x)
    ref_clip = jnp.tanh(ref) * 2.0 + 3.0

    # f32 compute path (strict check), both range_clipping branches.
    out = projection_forward(x, w1, b1, w2, b2, range_clipping=False,
                             compute_dtype=jnp.float32)
    out_clip = projection_forward(x, w1, b1, w2, b2, range_clipping=True,
                                  compute_dtype=jnp.float32)
    jax.block_until_ready((out, out_clip))
    assert out.shape == (batch, seq, 1)
    assert jnp.allclose(out, ref, atol=1e-4)
    assert jnp.allclose(out_clip, ref_clip, atol=1e-4)

    # Default bf16 MXU path (perf path), looser tolerance.
    out_bf16 = projection_forward(x, w1, b1, w2, b2, range_clipping=False)
    jax.block_until_ready(out_bf16)
    assert jnp.allclose(out_bf16, ref, atol=5e-2, rtol=5e-2)

    # Multi-tile / ragged path: n = 4*300 = 1200 -> two ~640-row tiles with a
    # masked partial last block (exercises the large-N code path cheaply).
    b2_, s2_ = 4, 300
    x_big = jax.random.normal(jax.random.PRNGKey(1), (b2_, s2_, input_dim),
                              dtype=jnp.float32)
    ref_big = reference(x_big)
    out_big = projection_forward(x_big, w1, b1, w2, b2,
                                 compute_dtype=jnp.float32)
    jax.block_until_ready(out_big)
    assert out_big.shape == (b2_, s2_, 1)
    assert jnp.allclose(out_big, ref_big, atol=1e-4)

    print("KERNEL_OK")
</pallas_src>

<mosaic_0001>
module attributes {stable_mosaic.version = 11 : i64} {
  func.func @_projection_kernel(%arg0: i32, %arg1: memref<16x32xf32, #tpu.memory_space<vmem>>, %arg2: memref<32x32xf32, #tpu.memory_space<vmem>>, %arg3: memref<1x32xf32, #tpu.memory_space<vmem>>, %arg4: memref<8x32xf32, #tpu.memory_space<vmem>>, %arg5: memref<1x1xf32, #tpu.memory_space<vmem>>, %arg6: memref<1x1x16xf32, #tpu.memory_space<vmem>>) attributes {dimension_semantics = [#tpu.dimension_semantics<parallel>], iteration_bounds = array<i64: 1>, scalar_prefetch = 0 : i64, scratch_operands = 0 : i64, tpu.core_type = #tpu.core_type<tc>, window_params = [{transform_indices = @transform_0, window_bounds = array<i64: 16, 32>}, {pipeline_mode = #tpu.pipeline_mode<synchronous>, transform_indices = @transform_1, window_bounds = array<i64: 32, 32>}, {pipeline_mode = #tpu.pipeline_mode<synchronous>, transform_indices = @transform_2, window_bounds = array<i64: 1, 32>}, {pipeline_mode = #tpu.pipeline_mode<synchronous>, transform_indices = @transform_3, window_bounds = array<i64: 8, 32>}, {pipeline_mode = #tpu.pipeline_mode<synchronous>, transform_indices = @transform_4, window_bounds = array<i64: 1, 1>}, {transform_indices = @transform_5, window_bounds = array<i64: 1, 1, 16>}]} {
    %c0 = arith.constant 0 : index
    %c0_0 = arith.constant 0 : index
    %0 = vector.load %arg1[%c0, %c0_0] : memref<16x32xf32, #tpu.memory_space<vmem>>, vector<16x32xf32>
    %c0_1 = arith.constant 0 : index
    %c0_2 = arith.constant 0 : index
    %1 = vector.load %arg2[%c0_1, %c0_2] : memref<32x32xf32, #tpu.memory_space<vmem>>, vector<32x32xf32>
    %cst = arith.constant dense<0.000000e+00> : vector<16x32xf32>
    %2 = tpu.matmul %0, %1, %cst {dimension_numbers = #tpu.dot_dimension_numbers<[1], [0], [0], [1], [0, 0, 1, 1], [], []>} : vector<16x32xf32>, vector<32x32xf32>, vector<16x32xf32> -> vector<16x32xf32>
    %c0_3 = arith.constant 0 : index
    %c0_4 = arith.constant 0 : index
    %3 = vector.load %arg3[%c0_3, %c0_4] : memref<1x32xf32, #tpu.memory_space<vmem>>, vector<1x32xf32>
    %4 = vector.broadcast %3 : vector<1x32xf32> to vector<16x32xf32>
    %5 = arith.addf %2, %4 : vector<16x32xf32>
    %cst_5 = arith.constant 0.000000e+00 : f32
    %6 = vector.broadcast %cst_5 : f32 to vector<16x32xf32>
    %7 = arith.maximumf %5, %6 : vector<16x32xf32>
    %c0_6 = arith.constant 0 : index
    %c0_7 = arith.constant 0 : index
    %8 = vector.load %arg4[%c0_6, %c0_7] : memref<8x32xf32, #tpu.memory_space<vmem>>, vector<8x32xf32>
    %cst_8 = arith.constant dense<0.000000e+00> : vector<8x16xf32>
    %9 = tpu.matmul %8, %7, %cst_8 {dimension_numbers = #tpu.dot_dimension_numbers<[1], [1], [0], [0], [0, 0, 1, 0], [], []>} : vector<8x32xf32>, vector<16x32xf32>, vector<8x16xf32> -> vector<8x16xf32>
    %10 = vector.extract_strided_slice %9 {offsets = [0, 0], sizes = [1, 16], strides = [1, 1]} : vector<8x16xf32> to vector<1x16xf32>
    %c0_9 = arith.constant 0 : index
    %c0_10 = arith.constant 0 : index
    %11 = vector.load %arg5[%c0_9, %c0_10] : memref<1x1xf32, #tpu.memory_space<vmem>>, vector<1x1xf32>
    %12 = vector.broadcast %11 : vector<1x1xf32> to vector<1x16xf32>
    %13 = arith.addf %10, %12 : vector<1x16xf32>
    %14 = vector.shape_cast %13 : vector<1x16xf32> to vector<1x1x16xf32>
    %c0_11 = arith.constant 0 : index
    %c0_12 = arith.constant 0 : index
    %c0_13 = arith.constant 0 : index
    %15 = vector.load %arg6[%c0_11, %c0_12, %c0_13] : memref<1x1x16xf32, #tpu.memory_space<vmem>>, vector<1x1x16xf32>
    tpu.vector_store %arg6[%c0_11, %c0_12, %c0_13], %14 {strides = array<i32>} : memref<1x1x16xf32, #tpu.memory_space<vmem>>, vector<1x1x16xf32>,
    return
  }
  func.func @transform_0(%arg0: i32) -> (i32, i32) {
    %c0_i32 = arith.constant 0 : i32
    %c0_i32_0 = arith.constant 0 : i32
    return %arg0, %c0_i32 : i32, i32
  }
  func.func @transform_1(%arg0: i32) -> (i32, i32) {
    %c0_i32 = arith.constant 0 : i32
    %c0_i32_0 = arith.constant 0 : i32
    %c0_i32_1 = arith.constant 0 : i32
    return %c0_i32, %c0_i32_0 : i32, i32
  }
  func.func @transform_2(%arg0: i32) -> (i32, i32) {
    %c0_i32 = arith.constant 0 : i32
    %c0_i32_0 = arith.constant 0 : i32
    %c0_i32_1 = arith.constant 0 : i32
    return %c0_i32, %c0_i32_0 : i32, i32
  }
  func.func @transform_3(%arg0: i32) -> (i32, i32) {
    %c0_i32 = arith.constant 0 : i32
    %c0_i32_0 = arith.constant 0 : i32
    %c0_i32_1 = arith.constant 0 : i32
    return %c0_i32, %c0_i32_0 : i32, i32
  }
  func.func @transform_4(%arg0: i32) -> (i32, i32) {
    %c0_i32 = arith.constant 0 : i32
    %c0_i32_0 = arith.constant 0 : i32
    %c0_i32_1 = arith.constant 0 : i32
    return %c0_i32, %c0_i32_0 : i32, i32
  }
  func.func @transform_5(%arg0: i32) -> (i32, i32, i32) {
    %c0_i32 = arith.constant 0 : i32
    %c0_i32_0 = arith.constant 0 : i32
    %c0_i32_1 = arith.constant 0 : i32
    return %arg0, %c0_i32, %c0_i32_0 : i32, i32, i32
  }
}

</mosaic_0001>

<bundles_post_ra>
// kernel: tpu_custom_call.1
= control target key start
LH: loop header
LB: loop body
LE: loop exit
PB: predicated region body
PF: predicated region fallthrough
CT: control target
= control target key end

     0   :  { %s473_s0 = inlined_call_operand.hbm [shape: f32[16,32], index: 0, kind: input, shape index: {}]   ;;  %s474_s1 = inlined_call_operand.hbm [shape: f32[32,32], index: 1, kind: input, shape index: {}]   ;;  %s475_s2 = inlined_call_operand.vmem [shape: f32[1,32], index: 2, kind: input, shape index: {}]   ;;  %s476_s3 = inlined_call_operand.vmem [shape: f32[8,32], index: 3, kind: input, shape index: {}]   ;;  %s477_s4 = inlined_call_operand.<no memory space> [shape: f32[1,1], index: 4, kind: input, shape index: {}]   ;;  %s478_s5 = inlined_call_operand.hbm [shape: f32[1,1,16], index: 5, kind: output, shape index: {}]  }
   0x1   :  { %v10_v0 = vstv %s477_s4 }
   0x2   :  { %11 = vst [vmem:[#allocation2] sm:$0x1] %v10_v0 }
   0x3   :  { %12 = vsyncpa [#allocation4], 0 }
   0x4   :  { %13 = vsyncpa [#allocation7], 0 }
   0x5   :  { %14 = vsyncpa [#allocation5], 0  ;;  %s384_s20 = smov [#allocation3]   ;;  %s312_s24 = scalar_lea.hbm %s473_s0, 256 }
   0x6   :  { %s20_s21 = sshll.u32 %s384_s20, 4  ;;  %p313_p0 = scmp.ne.s32.totalorder %s473_s0, %s312_s24  ;;  %s21_s21 = int_to_ptr.vmem [resolvable:$true] %s20_s21 }
   0x7   :  { %p316_p1 = scmp.lt.u32.totalorder %s312_s24, %s473_s0 }
   0x9   :  { %p318_p2 = pnand %p316_p1, %p313_p0 }
   0xb   :  { %321 = shalt.err (!%p318_p2)
}
   0xc   :  { %s322_s4 = scalar_lea.vmem %s21_s21, 256  ;;  %p327_p4 = scmp.lt.s32.totalorder %s21_s21, %s21_s21 }
   0xd   :  { %p323_p3 = scmp.ne.s32.totalorder %s21_s21, %s322_s4  ;;  %p328_p5 = scmp.lt.s32.totalorder %s322_s4, %s322_s4 }
   0xf   :  { %p329_p6 = por %p328_p5, %p327_p4 }
  0x11   :  { %p330_p7 = pnand %p329_p6, %p323_p3 }
  0x13   :  { %333 = shalt.err (!%p330_p7)
}
  0x14   :  { %s385_s29 = smov 128   ;;  %s386_s30 = smov 8  }
  0x15   :  { %26 = dma.hbm_to_vmem [thread:$0]  %s473_s0, 256, %s21_s21, [#allocation4], %s385_s29, %s385_s29, %s386_s30  }
  0x16   :  { %s387_s8 = smov [#allocation6]   ;;  %s334_s12 = scalar_lea.hbm %s474_s1, 512 }
  0x17   :  { %s32_s9 = sshll.u32 %s387_s8, 4  ;;  %p335_p8 = scmp.ne.s32.totalorder %s474_s1, %s334_s12  ;;  %s33_s9 = int_to_ptr.vmem [resolvable:$true] %s32_s9 }
  0x18   :  { %p338_p9 = scmp.lt.u32.totalorder %s334_s12, %s474_s1 }
  0x1a   :  { %p340_p10 = pnand %p338_p9, %p335_p8 }
  0x1c   :  { %343 = shalt.err (!%p340_p10)
}
  0x1d   :  { %s344_s17 = scalar_lea.vmem %s33_s9, 512  ;;  %p349_p12 = scmp.lt.s32.totalorder %s33_s9, %s33_s9 }
  0x1e   :  { %p345_p11 = scmp.ne.s32.totalorder %s33_s9, %s344_s17  ;;  %p350_p13 = scmp.lt.s32.totalorder %s344_s17, %s344_s17 }
  0x20   :  { %p351_p0 = por %p350_p13, %p349_p12 }
  0x22   :  { %p352_p1 = pnand %p351_p0, %p345_p11 }
  0x24   :  { %355 = shalt.err (!%p352_p1)
}
  0x25   :  { %38 = dma.hbm_to_vmem [thread:$0]  %s474_s1, 512, %s33_s9, [#allocation7], %s385_s29, %s385_s29, %s386_s30  }
  0x26   :  { %378 = dma.done.wait [#allocation4], 256  }
  0x27   :  { %379 = vsyncadd [#allocation4], 4294967040 }
  0x28   :  { %380 = dma.done.wait [#allocation7], 512  }
  0x29   :  { %381 = vsyncadd [#allocation7], 4294966784  ;;  %vm64_vm0 = vcmask 261120   ;;  %v53_v1 = vld [vmem:[#allocation6] sm:$0xff]  ;;  %v54_v2 = vld [vmem:[#allocation6 + $0x8] sm:$0xff]  ;;  %v388_v9 = vmov 0.0|0.0   ;;  %v234_v22 = vlaneseq }
  0x2a   :  { %v55_v3 = vld [vmem:[#allocation6 + $0x10] sm:$0xff]  ;;  %v290_v4 = vpack.c.bf16 %v54_v2, %v53_v1  ;;  %v56_v5 = vld [vmem:[#allocation6 + $0x18] sm:$0xff]  ;;  %298 = vmatprep.subr.bf16.mxu1 %v388_v9  ;;  %vm389_vm1 = vmmov 0   ;;  %v390_v10 = vmov 0.0   ;;  %v228_v11 = vld [vmem:[#allocation2] sm:$0x1] }
  0x2b   :  { %v51_v6 = vld [vmem:[#allocation3] sm:$0xff]  ;;  %v294_v7 = vpack.c.bf16 %v56_v5, %v55_v3  ;;  %v52_v8 = vld [vmem:[#allocation3 + $0x8] sm:$0xff]  ;;  %287 = vmatprep.mubr.msk.f32.mxu1 %vm389_vm1, %v390_v10  ;;  %v391_v12 = vmov 0   ;;  %v257_v13 = vld [vmem:[%s475_s2] ss:$0 sm:$0xff]  ;;  %v235_v23 = vshrl.u32 %v234_v22, 7 }
  0x2c   :  { %280 = vmatprep.mubr.msk.f32.mxu0 %vm64_vm0, %v51_v6  ;;  %291 = vmatprep.subr.bf16.mxu0 %v290_v4  ;;  %vm300_vm2 = vmpackc.low %vm64_vm0, %vm64_vm0  ;;  %v148_v21 = vld [vmem:[%s476_s3] sm:$0xff]  ;;  %s392_s2 = smov [#allocation8]   ;;  %vm239_vm3 = vcmask 122880  }
  0x2d   :  { %293 = vmatpush3.bf16.msra.mxu0 %v290_v4  ;;  %311 = vset.pattern.permute.xlu0 %v391_v12  ;;  %v236_v24 = vsub.s32 0, %v235_v23  ;;  %s247_s22 = sshll.u32 %s392_s2, 4  ;;  %s248_s22 = int_to_ptr.vmem [resolvable:$true] %s247_s22 }
  0x2e   :  { %295 = vmatprep.subr.bf16.mxu0 %v294_v7  ;;  %231 = vperm.xlu0 %311, %v228_v11   ;;  %s356_s23 = scalar_lea.vmem %s248_s22, 16  ;;  %s360_s24 = scalar_lea.vmem %s248_s22, 32 }
  0x2f   :  { %p357_p2 = scmp.ne.s32.totalorder %s248_s22, %s356_s23  ;;  %p361_p3 = scmp.lt.s32.totalorder %s248_s22, %s248_s22 }
  0x30   :  { %p362_p4 = scmp.lt.s32.totalorder %s360_s24, %s356_s23 }
  0x31   :  { %297 = vmatpush3.bf16.msra.mxu0 %v294_v7 }
  0x32   :  { %p363_p5 = por %p362_p4, %p361_p3 }
  0x34   :  { %281 = vmatmul.mubr.msk.f32.vlgmr.msra.gmra.mrb[0].mxu0 %vm64_vm0, %v52_v8  ;;  %p364_p6 = pnand %p363_p5, %p357_p2 }
  0xad   :  { %v232_v25 = vpop.permute.xlu0 %231 }
  0xae   :  { %v237_v26 = vrot.slane %v232_v25, %v236_v24 }
 0x107   :  { %v282_v14 = vpop.f32.mrb[0].mxu0 }
 0x108   :  { %v143_v15 = vadd.f32 %v282_v14, %v257_v13  ;;  %v137_v16 = vpop.f32.mrb[1].mxu0 }
 0x109   :  { %v138_v17 = vadd.f32 %v257_v13, %v137_v16 }
 0x10a   :  { %v147_v18 = vmax.f32 %v143_v15, 0.0 }
 0x10b   :  { %v146_v19 = vmax.f32 %v138_v17, 0.0 }
 0x10d   :  { %v299_v20 = vpack.c.bf16 %v147_v18, %v146_v19 }
 0x10f   :  { %301 = vmatpush3.bf16.xpose.msk.msra.mxu1 %vm300_vm2, %v299_v20 }
 0x116   :  { %288 = vmatmul.mubr.msk.f32.vlgmr.msra.gmra.mrb[0].mxu1 %vm64_vm0, %v148_v21 }
 0x1e9   :  { %v224_v27 = vpop.f32.mrb[0].mxu1 }
 0x1ea   :  { %v238_v28 = vadd.f32 %v237_v26, %v224_v27  ;;  %v289_v29 = vpop.f32.mrb[1].mxu1 }
 0x1ec   :  { %240 = vst.msk [vmem:[#allocation8] sm:$0x1] %vm239_vm3, %v238_v28 }
 0x1ed   :  { %367 = shalt.err (!%p364_p6)
}
 0x1ee   :  { %s368_s26 = scalar_lea.hbm %s478_s5, 16 }
 0x1ef   :  { %p369_p7 = scmp.ne.s32.totalorder %s478_s5, %s368_s26  ;;  %p372_p8 = scmp.lt.u32.totalorder %s368_s26, %s478_s5 }
 0x1f1   :  { %p374_p9 = pnand %p372_p8, %p369_p7 }
 0x1f3   :  { %377 = shalt.err (!%p374_p9)
}
 0x1f4   :  { %250 = dma.vmem_to_hbm [thread:$0]  %s248_s22, 16, %s478_s5, [#allocation5]  }
 0x1f5   :  { %382 = dma.done.wait [#allocation5], 16  }
 0x1f6   :  { %383 = vsyncadd [#allocation5], 4294967280 }
 0x1f7   :  { %254 = vsyncpa [#allocation4], 1 }
 0x1f8   :  { %255 = vsyncpa [#allocation7], 1 }
 0x1f9   :  { %256 = vsyncpa [#allocation5], 1 }

</bundles_post_ra>
